<compile_context>
chip_gen: v7x
topology: tpu7x:2x2x1
jax: 0.10.0
libtpu: 0.0.40
codegen_flags: <defaults>
</compile_context>

<pallas_src>
import jax
import jax.numpy as jnp
from jax.experimental import pallas as pl
from jax.experimental.pallas import tpu as pltpu


def _round_up(x, m):
    return ((x + m - 1) // m) * m


def _default_pack_factor(z_size, m):
    """Rows packed per lane row so packed lane width ~ MXU width."""
    try:
        kind = jax.devices()[0].device_kind.lower()
    except Exception:
        kind = ""
    # 128-wide MXU on v3/v4/v5e, 256-wide on v6e/v7x.
    target = 128 if ("v3" in kind or "v4" in kind or "v5" in kind) else 256
    width = max(z_size, m)
    p = max(1, target // width)
    p = 1 << (p.bit_length() - 1)       # floor to a power of two
    return min(p, 8)                     # divides 128 -> padding stays aligned


def _block_diag(mat, p):
    """(a, b) -> (p*a, p*b) block-diagonal with p copies of mat."""
    a, b = mat.shape
    eye_p = jnp.eye(p, dtype=mat.dtype)
    return jnp.einsum("pq,ab->paqb", eye_p, mat).reshape(p * a, p * b)


# ----------------------------------------------------------------------------
# Pallas kernel: one packed batch tile per grid step.
#   z_ref  : (bm, Z*P)   packed rows (streamed)
#   bt_ref : (Z*P, M*P)  block-diag Q R2^T   (VMEM resident)
#   at_ref : (M*P, Z*P)  block-diag (Q R1)^T (VMEM resident)
#   c_ref  : (1, M*P)    bias, tiled P times
#   rrii   : (1, M*P)    diag(R1)*diag(R2), tiled P times
#   sel    : (M*P, P)    0/1 segmented-sum selector (S[j*M+n, j] = 1)
# ----------------------------------------------------------------------------
def _sylvester_kernel(z_ref, bt_ref, at_ref, c_ref, rrii_ref, sel_ref,
                      z_out_ref, ldj_ref):
    z = z_ref[...].astype(jnp.float32)                                # (bm, ZP)
    bt = bt_ref[...]
    at = at_ref[...]
    c = c_ref[...]
    rrii = rrii_ref[...]
    sel = sel_ref[...]

    btzc = jnp.dot(z, bt, preferred_element_type=jnp.float32) + c     # (bm, MP)
    h = jnp.tanh(btzc)                                                 # EUP

    z_new = jnp.dot(h, at, preferred_element_type=jnp.float32) + z    # (bm, ZP)
    z_out_ref[...] = z_new.astype(z_out_ref.dtype)

    der_h = 1.0 - h * h                                                # tanh'
    log_terms = jnp.log(jnp.abs(der_h * rrii + 1.0))                   # (bm, MP)
    # Segmented per-row (per 32-lane group) sum as a matmul -> already
    # lane-oriented, no sublane->lane relayout needed for the store.
    ldj_ref[...] = jnp.dot(log_terms, sel,
                           preferred_element_type=jnp.float32)         # (bm, P)


def sylvester_pallas(z, bt, a_t, c, rrii, *, pack=None, max_rows_per_tile=8192):
    """Sylvester flow hot path on TPU via Pallas.

    z:    (B, Z) float32 / bfloat16 (compute is f32)
    bt:   (Z, M) float32   = Q @ R2^T
    a_t:  (M, Z) float32   = (Q @ R1)^T
    c:    (1, M) float32
    rrii: (1, M) float32   = diag(R1) * diag(R2)
    returns: (z_new (B, Z), ldj (B,) float32)
    """
    B, Z = z.shape
    M = bt.shape[1]
    P = _default_pack_factor(Z, M) if pack is None else pack
    assert 128 % P == 0, "pack factor must divide 128"

    # Pad the batch only to a multiple of 128 first (alignment), then size the
    # tiles so total padding stays small (never a full tile of waste).
    B_pad = _round_up(B, 128)
    if B_pad <= max_rows_per_tile:
        num_tiles = 1                     # single tile: no per-step overhead
    else:
        num_tiles = pl.cdiv(B_pad, max_rows_per_tile)
        if num_tiles % 2:                 # v7x megacore: keep both TCs busy
            num_tiles += 1
    block_batch = _round_up(pl.cdiv(B_pad, num_tiles), 128)   # rows per tile
    B_pad = num_tiles * block_batch
    bm = block_batch // P                 # packed rows per tile
    ZP, MP = Z * P, M * P

    z_in = z if B_pad == B else jnp.pad(z, ((0, B_pad - B), (0, 0)))
    zp = z_in.reshape(B_pad // P, ZP)     # free: rows are contiguous

    bt_p = _block_diag(bt.astype(jnp.float32), P)      # (ZP, MP)
    at_p = _block_diag(a_t.astype(jnp.float32), P)     # (MP, ZP)
    c_p = jnp.tile(c.astype(jnp.float32), (1, P))      # (1, MP)
    rrii_p = jnp.tile(rrii.astype(jnp.float32), (1, P))
    sel = jnp.repeat(jnp.eye(P, dtype=jnp.float32), M, axis=0)   # (MP, P)

    itemsize = jnp.dtype(z.dtype).itemsize
    cost = pl.CostEstimate(
        flops=4 * B_pad * Z * M * P + 2 * B_pad * M * P,
        transcendentals=2 * B_pad * M,
        bytes_accessed=2 * B_pad * Z * itemsize + B_pad * 4
                       + 2 * ZP * MP * 4 + 3 * MP * 4,
    )
    # Explicit (conservative) VMEM budget: z tile in/out, double-buffered,
    # plus resident weights; stays well under every generation's physical VMEM.
    vmem_needed = 4 * bm * ZP * 4 + 3 * ZP * MP * 4 + 4 * bm * P * 4 + (4 << 20)
    vmem_limit = min(max(vmem_needed, 16 << 20), 48 << 20)

    z_new_p, ldj_p = pl.pallas_call(
        _sylvester_kernel,
        out_shape=(
            jax.ShapeDtypeStruct((B_pad // P, ZP), z.dtype),
            jax.ShapeDtypeStruct((B_pad // P, P), jnp.float32),
        ),
        grid_spec=pl.GridSpec(
            grid=(num_tiles,),
            in_specs=[
                pl.BlockSpec((bm, ZP), lambda i: (i, 0)),   # z   (streamed)
                pl.BlockSpec((ZP, MP), lambda i: (0, 0)),   # Bt  (resident)
                pl.BlockSpec((MP, ZP), lambda i: (0, 0)),   # A^T (resident)
                pl.BlockSpec((1, MP), lambda i: (0, 0)),    # c
                pl.BlockSpec((1, MP), lambda i: (0, 0)),    # rrii
                pl.BlockSpec((MP, P), lambda i: (0, 0)),    # selector
            ],
            out_specs=[
                pl.BlockSpec((bm, ZP), lambda i: (i, 0)),   # z'
                pl.BlockSpec((bm, P), lambda i: (i, 0)),    # ldj (lane-oriented)
            ],
        ),
        compiler_params=pltpu.CompilerParams(
            dimension_semantics=("parallel",),
            vmem_limit_bytes=int(vmem_limit)),
        cost_estimate=cost,
    )(zp, bt_p, at_p, c_p, rrii_p, sel)

    z_new = z_new_p.reshape(B_pad, Z)[:B]
    ldj = ldj_p.reshape(-1)[:B]
    return z_new, ldj


# ----------------------------------------------------------------------------
# Parameter setup (plain JAX glue; mirrors Sylvester.__init__ / create_rs /
# create_q exactly).
# ----------------------------------------------------------------------------
def init_sylvester_params(key, z_size, m=None, hh=None):
    m = z_size if m is None else m
    hh = (z_size - 1) if hh is None else hh
    k_v, k_rs, k_r2, k_c = jax.random.split(key, 4)
    params = {
        "v": jax.random.uniform(k_v, (hh, z_size), jnp.float32, -1.0, 1.0),
        "Rs": jax.random.uniform(k_rs, (m, m), jnp.float32, -1.0, 1.0),
        "r2diag": jax.random.uniform(k_r2, (m,), jnp.float32, -1.0, 1.0),
        "c": jax.random.uniform(k_c, (1, m), jnp.float32, -1.0, 1.0),
    }
    return params, m, hh


def derive_flow_matrices(params, z_size, m):
    Rs, r2diag, v = params["Rs"], params["r2diag"], params["v"]

    # create_rs
    triu_mask_1 = jnp.triu(jnp.ones((m, m), jnp.float32), k=0)
    triu_mask_2 = jnp.triu(jnp.ones((m, m), jnp.float32), k=1)
    r1 = triu_mask_1 * Rs
    r2 = triu_mask_2 * Rs
    r2 = r2.at[jnp.arange(m), jnp.arange(m)].set(r2diag)

    # create_q: product of Householder reflections
    norms = jnp.linalg.norm(v, ord=2, axis=1, keepdims=True)
    vn = v / norms
    eye = jnp.eye(z_size, dtype=jnp.float32)
    ivvT = eye[None, :, :] - 2.0 * vn[:, :, None] * vn[:, None, :]
    q = ivvT[0]
    for i in range(1, ivvT.shape[0]):
        q = q @ ivvT[i]
    q = q[:, :m]                                   # (z_size, m)

    bt = q @ r2.T                                  # (z_size, m)
    a = q @ r1                                     # (z_size, m)
    a_t = a.T                                      # (m, z_size)
    rrii = (jnp.diag(r1) * jnp.diag(r2))[None, :]  # (1, m)
    return bt, a_t, rrii


# Pure-JAX reference of the forward pass (for correctness check).
def sylvester_ref(z, bt, a_t, c, rrii):
    btzc = z @ bt + c
    h = jnp.tanh(btzc)
    z_new = h @ a_t + z
    ldj = (1.0 - h ** 2) * rrii + 1.0
    ldj = jnp.log(jnp.abs(ldj)).sum(axis=1)
    return z_new, ldj


if __name__ == "__main__":
    Z_SIZE = 32
    BATCH = 300   # not a multiple of 128 -> exercises padding/remainder

    key = jax.random.PRNGKey(0)
    k_params, k_z = jax.random.split(key)

    params, m, hh = init_sylvester_params(k_params, Z_SIZE)
    bt, a_t, rrii = derive_flow_matrices(params, Z_SIZE, m)
    c = params["c"]

    z = jax.random.normal(k_z, (BATCH, Z_SIZE), jnp.float32)
    z_ref, ldj_ref = sylvester_ref(z, bt, a_t, c, rrii)

    # Default path: single tile (B_pad = 384 rows), lane-packed.
    z_new, ldj = sylvester_pallas(z, bt, a_t, c, rrii)
    jax.block_until_ready((z_new, ldj))
    assert z_new.shape == (BATCH, Z_SIZE)
    assert ldj.shape == (BATCH,)
    assert jnp.allclose(z_new, z_ref, atol=1e-4, rtol=1e-4)
    assert jnp.allclose(ldj, ldj_ref, atol=1e-4, rtol=1e-4)

    # Also exercise the multi-tile path (forced small tiles) for robustness.
    z_new2, ldj2 = sylvester_pallas(z, bt, a_t, c, rrii, max_rows_per_tile=128)
    jax.block_until_ready((z_new2, ldj2))
    assert jnp.allclose(z_new2, z_ref, atol=1e-4, rtol=1e-4)
    assert jnp.allclose(ldj2, ldj_ref, atol=1e-4, rtol=1e-4)

    # TODO(synk): the ReLU branch (use_tanh=False) is unimplemented in the
    # PyTorch module itself, so only tanh is supported here.
    print("KERNEL_OK")
</pallas_src>

<mosaic_0001>
module attributes {stable_mosaic.version = 11 : i64} {
  func.func @_sylvester_kernel(%arg0: i32, %arg1: memref<48x256xf32, #tpu.memory_space<vmem>>, %arg2: memref<256x256xf32, #tpu.memory_space<vmem>>, %arg3: memref<256x256xf32, #tpu.memory_space<vmem>>, %arg4: memref<1x256xf32, #tpu.memory_space<vmem>>, %arg5: memref<1x256xf32, #tpu.memory_space<vmem>>, %arg6: memref<256x8xf32, #tpu.memory_space<vmem>>, %arg7: memref<48x256xf32, #tpu.memory_space<vmem>>, %arg8: memref<48x8xf32, #tpu.memory_space<vmem>>) attributes {dimension_semantics = [#tpu.dimension_semantics<parallel>], iteration_bounds = array<i64: 1>, scalar_prefetch = 0 : i64, scratch_operands = 0 : i64, tpu.core_type = #tpu.core_type<tc>, window_params = [{transform_indices = @transform_0, window_bounds = array<i64: 48, 256>}, {pipeline_mode = #tpu.pipeline_mode<synchronous>, transform_indices = @transform_1, window_bounds = array<i64: 256, 256>}, {pipeline_mode = #tpu.pipeline_mode<synchronous>, transform_indices = @transform_2, window_bounds = array<i64: 256, 256>}, {pipeline_mode = #tpu.pipeline_mode<synchronous>, transform_indices = @transform_3, window_bounds = array<i64: 1, 256>}, {pipeline_mode = #tpu.pipeline_mode<synchronous>, transform_indices = @transform_4, window_bounds = array<i64: 1, 256>}, {pipeline_mode = #tpu.pipeline_mode<synchronous>, transform_indices = @transform_5, window_bounds = array<i64: 256, 8>}, {transform_indices = @transform_6, window_bounds = array<i64: 48, 256>}, {transform_indices = @transform_7, window_bounds = array<i64: 48, 8>}]} {
    %c0 = arith.constant 0 : index
    %c0_0 = arith.constant 0 : index
    %0 = vector.load %arg1[%c0, %c0_0] : memref<48x256xf32, #tpu.memory_space<vmem>>, vector<48x256xf32>
    %c0_1 = arith.constant 0 : index
    %c0_2 = arith.constant 0 : index
    %1 = vector.load %arg2[%c0_1, %c0_2] : memref<256x256xf32, #tpu.memory_space<vmem>>, vector<256x256xf32>
    %c0_3 = arith.constant 0 : index
    %c0_4 = arith.constant 0 : index
    %2 = vector.load %arg3[%c0_3, %c0_4] : memref<256x256xf32, #tpu.memory_space<vmem>>, vector<256x256xf32>
    %c0_5 = arith.constant 0 : index
    %c0_6 = arith.constant 0 : index
    %3 = vector.load %arg4[%c0_5, %c0_6] : memref<1x256xf32, #tpu.memory_space<vmem>>, vector<1x256xf32>
    %c0_7 = arith.constant 0 : index
    %c0_8 = arith.constant 0 : index
    %4 = vector.load %arg5[%c0_7, %c0_8] : memref<1x256xf32, #tpu.memory_space<vmem>>, vector<1x256xf32>
    %c0_9 = arith.constant 0 : index
    %c0_10 = arith.constant 0 : index
    %5 = vector.load %arg6[%c0_9, %c0_10] : memref<256x8xf32, #tpu.memory_space<vmem>>, vector<256x8xf32>
    %cst = arith.constant dense<0.000000e+00> : vector<48x256xf32>
    %6 = tpu.matmul %0, %1, %cst {dimension_numbers = #tpu.dot_dimension_numbers<[1], [0], [0], [1], [0, 0, 1, 1], [], []>} : vector<48x256xf32>, vector<256x256xf32>, vector<48x256xf32> -> vector<48x256xf32>
    %7 = vector.broadcast %3 : vector<1x256xf32> to vector<48x256xf32>
    %8 = arith.addf %6, %7 : vector<48x256xf32>
    %9 = math.tanh %8 : vector<48x256xf32>
    %cst_11 = arith.constant dense<0.000000e+00> : vector<48x256xf32>
    %10 = tpu.matmul %9, %2, %cst_11 {dimension_numbers = #tpu.dot_dimension_numbers<[1], [0], [0], [1], [0, 0, 1, 1], [], []>} : vector<48x256xf32>, vector<256x256xf32>, vector<48x256xf32> -> vector<48x256xf32>
    %11 = arith.addf %10, %0 : vector<48x256xf32>
    %c0_12 = arith.constant 0 : index
    %c0_13 = arith.constant 0 : index
    %12 = vector.load %arg7[%c0_12, %c0_13] : memref<48x256xf32, #tpu.memory_space<vmem>>, vector<48x256xf32>
    tpu.vector_store %arg7[%c0_12, %c0_13], %11 {strides = array<i32>} : memref<48x256xf32, #tpu.memory_space<vmem>>, vector<48x256xf32>,
    %13 = arith.mulf %9, %9 : vector<48x256xf32>
    %cst_14 = arith.constant 1.000000e+00 : f32
    %14 = vector.broadcast %cst_14 : f32 to vector<48x256xf32>
    %15 = arith.subf %14, %13 : vector<48x256xf32>
    %16 = vector.broadcast %4 : vector<1x256xf32> to vector<48x256xf32>
    %17 = arith.mulf %15, %16 : vector<48x256xf32>
    %cst_15 = arith.constant 1.000000e+00 : f32
    %18 = vector.broadcast %cst_15 : f32 to vector<48x256xf32>
    %19 = arith.addf %17, %18 : vector<48x256xf32>
    %20 = math.absf %19 : vector<48x256xf32>
    %21 = math.log %20 : vector<48x256xf32>
    %cst_16 = arith.constant dense<0.000000e+00> : vector<48x8xf32>
    %22 = tpu.matmul %21, %5, %cst_16 {dimension_numbers = #tpu.dot_dimension_numbers<[1], [0], [0], [1], [0, 0, 1, 1], [], []>} : vector<48x256xf32>, vector<256x8xf32>, vector<48x8xf32> -> vector<48x8xf32>
    %c0_17 = arith.constant 0 : index
    %c0_18 = arith.constant 0 : index
    %23 = vector.load %arg8[%c0_17, %c0_18] : memref<48x8xf32, #tpu.memory_space<vmem>>, vector<48x8xf32>
    tpu.vector_store %arg8[%c0_17, %c0_18], %22 {strides = array<i32>} : memref<48x8xf32, #tpu.memory_space<vmem>>, vector<48x8xf32>,
    return
  }
  func.func @transform_0(%arg0: i32) -> (i32, i32) {
    %c0_i32 = arith.constant 0 : i32
    %c0_i32_0 = arith.constant 0 : i32
    return %arg0, %c0_i32 : i32, i32
  }
  func.func @transform_1(%arg0: i32) -> (i32, i32) {
    %c0_i32 = arith.constant 0 : i32
    %c0_i32_0 = arith.constant 0 : i32
    %c0_i32_1 = arith.constant 0 : i32
    return %c0_i32, %c0_i32_0 : i32, i32
  }
  func.func @transform_2(%arg0: i32) -> (i32, i32) {
    %c0_i32 = arith.constant 0 : i32
    %c0_i32_0 = arith.constant 0 : i32
    %c0_i32_1 = arith.constant 0 : i32
    return %c0_i32, %c0_i32_0 : i32, i32
  }
  func.func @transform_3(%arg0: i32) -> (i32, i32) {
    %c0_i32 = arith.constant 0 : i32
    %c0_i32_0 = arith.constant 0 : i32
    %c0_i32_1 = arith.constant 0 : i32
    return %c0_i32, %c0_i32_0 : i32, i32
  }
  func.func @transform_4(%arg0: i32) -> (i32, i32) {
    %c0_i32 = arith.constant 0 : i32
    %c0_i32_0 = arith.constant 0 : i32
    %c0_i32_1 = arith.constant 0 : i32
    return %c0_i32, %c0_i32_0 : i32, i32
  }
  func.func @transform_5(%arg0: i32) -> (i32, i32) {
    %c0_i32 = arith.constant 0 : i32
    %c0_i32_0 = arith.constant 0 : i32
    %c0_i32_1 = arith.constant 0 : i32
    return %c0_i32, %c0_i32_0 : i32, i32
  }
  func.func @transform_6(%arg0: i32) -> (i32, i32) {
    %c0_i32 = arith.constant 0 : i32
    %c0_i32_0 = arith.constant 0 : i32
    return %arg0, %c0_i32 : i32, i32
  }
  func.func @transform_7(%arg0: i32) -> (i32, i32) {
    %c0_i32 = arith.constant 0 : i32
    %c0_i32_0 = arith.constant 0 : i32
    return %arg0, %c0_i32 : i32, i32
  }
}

</mosaic_0001>

<bundles_post_ra>
// kernel: tpu_custom_call.1
= control target key start
LH: loop header
LB: loop body
LE: loop exit
PB: predicated region body
PF: predicated region fallthrough
CT: control target
= control target key end

     0   :  { %13 = vsyncpa [#allocation3], 0  ;;  %s1411_s0 = inlined_call_operand.vmem [shape: f32[48,256], index: 0, kind: input, shape index: {}]   ;;  %s1412_s1 = inlined_call_operand.hbm [shape: f32[256,256], index: 1, kind: input, shape index: {}]   ;;  %s1413_s2 = inlined_call_operand.hbm [shape: f32[256,256], index: 2, kind: input, shape index: {}]   ;;  %s1414_s3 = inlined_call_operand.vmem [shape: f32[1,256], index: 3, kind: input, shape index: {}]   ;;  %s1415_s4 = inlined_call_operand.vmem [shape: f32[1,256], index: 4, kind: input, shape index: {}]   ;;  %s1416_s5 = inlined_call_operand.vmem [shape: f32[256,8], index: 5, kind: input, shape index: {}]   ;;  %s1417_s6 = inlined_call_operand.hbm [shape: f32[48,256], index: 6, kind: output, shape index: {0}]   ;;  %s1418_s7 = inlined_call_operand.vmem [shape: f32[48,8], index: 7, kind: output, shape index: {1}]  }
   0x1   :  { %14 = vsyncpa [#allocation6], 0 }
   0x2   :  { %15 = vsyncpa [#allocation4], 0  ;;  %s1035_s24 = smov [#allocation2]   ;;  %s963_s28 = scalar_lea.hbm %s1412_s1, 8192 }
   0x3   :  { %s23_s25 = sshll.u32 %s1035_s24, 4  ;;  %p964_p0 = scmp.ne.s32.totalorder %s1412_s1, %s963_s28  ;;  %s24_s25 = int_to_ptr.vmem [resolvable:$true] %s23_s25 }
   0x4   :  { %p967_p1 = scmp.lt.u32.totalorder %s963_s28, %s1412_s1 }
   0x6   :  { %p969_p2 = pnand %p967_p1, %p964_p0 }
   0x8   :  { %972 = shalt.err (!%p969_p2)
}
   0x9   :  { %s973_s10 = scalar_lea.vmem %s24_s25, 8192  ;;  %p978_p4 = scmp.lt.s32.totalorder %s24_s25, %s24_s25 }
   0xa   :  { %p974_p3 = scmp.ne.s32.totalorder %s24_s25, %s973_s10  ;;  %p979_p5 = scmp.lt.s32.totalorder %s973_s10, %s973_s10 }
   0xc   :  { %p980_p6 = por %p979_p5, %p978_p4 }
   0xe   :  { %p981_p7 = pnand %p980_p6, %p974_p3 }
  0x10   :  { %984 = shalt.err (!%p981_p7)
}
  0x11   :  { %s1036_s11 = smov 256   ;;  %s1037_s12 = smov 16  }
  0x12   :  { %29 = dma.hbm_to_vmem [thread:$0]  %s1412_s1, 8192, %s24_s25, [#allocation3], %s1036_s11, %s1036_s11, %s1037_s12  }
  0x13   :  { %s1038_s15 = smov [#allocation5]   ;;  %s985_s19 = scalar_lea.hbm %s1413_s2, 8192 }
  0x14   :  { %s35_s16 = sshll.u32 %s1038_s15, 4  ;;  %p986_p8 = scmp.ne.s32.totalorder %s1413_s2, %s985_s19  ;;  %s36_s16 = int_to_ptr.vmem [resolvable:$true] %s35_s16 }
  0x15   :  { %p989_p9 = scmp.lt.u32.totalorder %s985_s19, %s1413_s2 }
  0x17   :  { %p991_p10 = pnand %p989_p9, %p986_p8 }
  0x19   :  { %994 = shalt.err (!%p991_p10)
}
  0x1a   :  { %s995_s24 = scalar_lea.vmem %s36_s16, 8192  ;;  %p1000_p12 = scmp.lt.s32.totalorder %s36_s16, %s36_s16 }
  0x1b   :  { %p996_p11 = scmp.ne.s32.totalorder %s36_s16, %s995_s24  ;;  %p1001_p13 = scmp.lt.s32.totalorder %s995_s24, %s995_s24 }
  0x1d   :  { %p1002_p0 = por %p1001_p13, %p1000_p12 }
  0x1f   :  { %p1003_p1 = pnand %p1002_p0, %p996_p11 }
  0x21   :  { %1006 = shalt.err (!%p1003_p1)
}
  0x22   :  { %41 = dma.hbm_to_vmem [thread:$0]  %s1413_s2, 8192, %s36_s16, [#allocation6], %s1036_s11, %s1036_s11, %s1037_s12  }
  0x23   :  { %1029 = dma.done.wait [#allocation3], 8192  }
  0x24   :  { %1030 = vsyncadd [#allocation3], 4294959104 }
  0x25   :  { %1031 = dma.done.wait [#allocation6], 8192  }
  0x26   :  { %1032 = vsyncadd [#allocation6], 4294959104  ;;  %v67_v0 = vld [vmem:[#allocation2 + $0x8] sm:$0xff]  ;;  %v69_v1 = vld [vmem:[#allocation2 + $0x18] sm:$0xff]  ;;  %vm655_vm0 = vcmask 64512  }
  0x27   :  { %v66_v2 = vld [vmem:[#allocation2] sm:$0xff]  ;;  %v734_v3 = vpack.c.bf16 %v69_v1, %v67_v0  ;;  %v68_v4 = vld [vmem:[#allocation2 + $0x10] sm:$0xff]  ;;  %v71_v5 = vld [vmem:[#allocation2 + $0x28] sm:$0xff] }
  0x28   :  { %v73_v6 = vld [vmem:[#allocation2 + $0x38] sm:$0xff]  ;;  %v736_v7 = vpack.c.bf16 %v68_v4, %v66_v2  ;;  %v70_v9 = vld [vmem:[#allocation2 + $0x20] sm:$0xff]  ;;  %v72_v10 = vld [vmem:[#allocation2 + $0x30] sm:$0xff] }
  0x29   :  { %v738_v8 = vpack.c.bf16 %v73_v6, %v71_v5  ;;  %v75_v11 = vld [vmem:[#allocation2 + $0x48] sm:$0xff]  ;;  %735 = vmatprep.subr.bf16.mxu0 %v734_v3  ;;  %v77_v12 = vld [vmem:[#allocation2 + $0x58] sm:$0xff]  ;;  %v740_v13 = vpack.c.bf16 %v72_v10, %v70_v9  ;;  %v74_v15 = vld [vmem:[#allocation2 + $0x40] sm:$0xff] }
  0x2a   :  { %737 = vmatpush1.bf16.msra.mxu0 %v736_v7  ;;  %v742_v14 = vpack.c.bf16 %v77_v12, %v75_v11  ;;  %v76_v16 = vld [vmem:[#allocation2 + $0x50] sm:$0xff]  ;;  %v79_v17 = vld [vmem:[#allocation2 + $0x68] sm:$0xff]  ;;  %v81_v18 = vld [vmem:[#allocation2 + $0x78] sm:$0xff] }
  0x2b   :  { %739 = vmatprep.subr.bf16.mxu0 %v738_v8  ;;  %v744_v19 = vpack.c.bf16 %v76_v16, %v74_v15  ;;  %v746_v20 = vpack.c.bf16 %v81_v18, %v79_v17  ;;  %v78_v21 = vld [vmem:[#allocation2 + $0x60] sm:$0xff]  ;;  %v80_v22 = vld [vmem:[#allocation2 + $0x70] sm:$0xff]  ;;  %v83_v23 = vld [vmem:[#allocation2 + $0x88] sm:$0xff] }
  0x2c   :  { %v85_v24 = vld [vmem:[#allocation2 + $0x98] sm:$0xff]  ;;  %v748_v25 = vpack.c.bf16 %v80_v22, %v78_v21  ;;  %v82_v27 = vld [vmem:[#allocation2 + $0x80] sm:$0xff]  ;;  %v84_v28 = vld [vmem:[#allocation2 + $0x90] sm:$0xff] }
  0x2d   :  { %v750_v26 = vpack.c.bf16 %v85_v24, %v83_v23  ;;  %v87_v29 = vld [vmem:[#allocation2 + $0xa8] sm:$0xff]  ;;  %v89_v30 = vld [vmem:[#allocation2 + $0xb8] sm:$0xff]  ;;  %v752_v31 = vpack.c.bf16 %v84_v28, %v82_v27  ;;  %v86_v33 = vld [vmem:[#allocation2 + $0xa0] sm:$0xff] }
  0x2e   :  { %741 = vmatpush1.bf16.msra.mxu0 %v740_v13  ;;  %v754_v32 = vpack.c.bf16 %v89_v30, %v87_v29  ;;  %v88_v34 = vld [vmem:[#allocation2 + $0xb0] sm:$0xff]  ;;  %v91_v35 = vld [vmem:[#allocation2 + $0xc8] sm:$0xff]  ;;  %v93_v36 = vld [vmem:[#allocation2 + $0xd8] sm:$0xff] }
  0x2f   :  { %743 = vmatprep.subr.bf16.mxu0 %v742_v14  ;;  %v756_v37 = vpack.c.bf16 %v88_v34, %v86_v33  ;;  %v758_v38 = vpack.c.bf16 %v93_v36, %v91_v35  ;;  %v90_v39 = vld [vmem:[#allocation2 + $0xc0] sm:$0xff]  ;;  %v92_v40 = vld [vmem:[#allocation2 + $0xd0] sm:$0xff]  ;;  %v1113_v41 = vld [vmem:[%s1411_s0 + $0x8] sm:$0xff] }
  0x30   :  { %v95_v42 = vld [vmem:[#allocation2 + $0xe8] sm:$0xff]  ;;  %v97_v43 = vld [vmem:[#allocation2 + $0xf8] sm:$0xff]  ;;  %303 = vmatprep.mubr.f32.mxu0 %v1113_v41  ;;  %v760_v44 = vpack.c.bf16 %v92_v40, %v90_v39  ;;  %v94_v45 = vld [vmem:[#allocation2 + $0xe0] sm:$0xff] }
  0x31   :  { %v96_v46 = vld [vmem:[#allocation2 + $0xf0] sm:$0xff]  ;;  %v99_v47 = vld [vmem:[#allocation2 + $0x108] sm:$0xff]  ;;  %v762_v48 = vpack.c.bf16 %v97_v43, %v95_v42  ;;  %v101_v49 = vld [vmem:[#allocation2 + $0x118] sm:$0xff] }
  0x32   :  { %745 = vmatpush1.bf16.msra.mxu0 %v744_v19  ;;  %v131_v50 = vld [vmem:[#allocation5 + $0x8] sm:$0xff]  ;;  %v133_v51 = vld [vmem:[#allocation5 + $0x18] sm:$0xff]  ;;  %v130_v53 = vld [vmem:[#allocation5] sm:$0xff]  ;;  %v764_v60 = vpack.c.bf16 %v96_v46, %v94_v45  ;;  %v766_v0 = vpack.c.bf16 %v101_v49, %v99_v47 }
  0x33   :  { %747 = vmatprep.subr.bf16.mxu0 %v746_v20  ;;  %v798_v52 = vpack.c.bf16 %v133_v51, %v131_v50  ;;  %v132_v54 = vld [vmem:[#allocation5 + $0x10] sm:$0xff]  ;;  %v135_v55 = vld [vmem:[#allocation5 + $0x28] sm:$0xff]  ;;  %v137_v57 = vld [vmem:[#allocation5 + $0x38] sm:$0xff] }
  0x34   :  { %v800_v56 = vpack.c.bf16 %v132_v54, %v130_v53  ;;  %v134_v58 = vld [vmem:[#allocation5 + $0x20] sm:$0xff]  ;;  %v136_v59 = vld [vmem:[#allocation5 + $0x30] sm:$0xff]  ;;  %v802_v61 = vpack.c.bf16 %v137_v57, %v135_v55  ;;  %v139_v62 = vld [vmem:[#allocation5 + $0x48] sm:$0xff] }
  0x35   :  { %799 = vmatprep.subr.bf16.mxu1 %v798_v52  ;;  %v141_v63 = vld [vmem:[#allocation5 + $0x58] sm:$0xff]  ;;  %v98_v1 = vld [vmem:[#allocation2 + $0x100] sm:$0xff]  ;;  %v100_v2 = vld [vmem:[#allocation2 + $0x110] sm:$0xff]  ;;  %v804_v4 = vpack.c.bf16 %v136_v59, %v134_v58 }
  0x36   :  { %749 = vmatpush1.bf16.msra.mxu0 %v748_v25  ;;  %v103_v3 = vld [vmem:[#allocation2 + $0x128] sm:$0xff]  ;;  %801 = vmatpush1.bf16.msra.mxu1 %v800_v56  ;;  %v105_v5 = vld [vmem:[#allocation2 + $0x138] sm:$0xff]  ;;  %v806_v6 = vpack.c.bf16 %v141_v63, %v139_v62  ;;  %v138_v7 = vld [vmem:[#allocation5 + $0x40] sm:$0xff]  ;;  %v768_v11 = vpack.c.bf16 %v100_v2, %v98_v1 }
  0x37   :  { %751 = vmatprep.subr.bf16.mxu0 %v750_v26  ;;  %803 = vmatprep.subr.bf16.mxu1 %v802_v61  ;;  %v140_v8 = vld [vmem:[#allocation5 + $0x50] sm:$0xff]  ;;  %v143_v9 = vld [vmem:[#allocation5 + $0x68] sm:$0xff]  ;;  %v145_v10 = vld [vmem:[#allocation5 + $0x78] sm:$0xff]  ;;  %v770_v12 = vpack.c.bf16 %v105_v5, %v103_v3 }
  0x38   :  { %v102_v13 = vld [vmem:[#allocation2 + $0x120] sm:$0xff]  ;;  %v104_v14 = vld [vmem:[#allocation2 + $0x130] sm:$0xff]  ;;  %v107_v15 = vld [vmem:[#allocation2 + $0x148] sm:$0xff]  ;;  %v808_v16 = vpack.c.bf16 %v140_v8, %v138_v7  ;;  %v810_v18 = vpack.c.bf16 %v145_v10, %v143_v9 }
  0x39   :  { %v109_v17 = vld [vmem:[#allocation2 + $0x158] sm:$0xff]  ;;  %v142_v19 = vld [vmem:[#allocation5 + $0x60] sm:$0xff]  ;;  %v144_v20 = vld [vmem:[#allocation5 + $0x70] sm:$0xff]  ;;  %v772_v23 = vpack.c.bf16 %v104_v14, %v102_v13 }
  0x3a   :  { %753 = vmatpush1.bf16.msra.mxu0 %v752_v31  ;;  %805 = vmatpush1.bf16.msra.mxu1 %v804_v4  ;;  %v147_v21 = vld [vmem:[#allocation5 + $0x88] sm:$0xff]  ;;  %v149_v22 = vld [vmem:[#allocation5 + $0x98] sm:$0xff]  ;;  %v774_v24 = vpack.c.bf16 %v109_v17, %v107_v15  ;;  %v106_v25 = vld [vmem:[#allocation2 + $0x140] sm:$0xff]  ;;  %v812_v28 = vpack.c.bf16 %v144_v20, %v142_v19 }
  0x3b   :  { %755 = vmatprep.subr.bf16.mxu0 %v754_v32  ;;  %807 = vmatprep.subr.bf16.mxu1 %v806_v6  ;;  %v108_v26 = vld [vmem:[#allocation2 + $0x150] sm:$0xff]  ;;  %v111_v27 = vld [vmem:[#allocation2 + $0x168] sm:$0xff]  ;;  %v113_v29 = vld [vmem:[#allocation2 + $0x178] sm:$0xff]  ;;  %v814_v30 = vpack.c.bf16 %v149_v22, %v147_v21 }
  0x3c   :  { %v146_v31 = vld [vmem:[#allocation5 + $0x80] sm:$0xff]  ;;  %v148_v32 = vld [vmem:[#allocation5 + $0x90] sm:$0xff]  ;;  %v151_v33 = vld [vmem:[#allocation5 + $0xa8] sm:$0xff]  ;;  %v776_v35 = vpack.c.bf16 %v108_v26, %v106_v25  ;;  %v778_v36 = vpack.c.bf16 %v113_v29, %v111_v27 }
  0x3d   :  { %v153_v34 = vld [vmem:[#allocation5 + $0xb8] sm:$0xff]  ;;  %v115_v39 = vld [vmem:[#allocation2 + $0x188] sm:$0xff]  ;;  %v816_v40 = vpack.c.bf16 %v148_v32, %v146_v31  ;;  %v152_v45 = vld [vmem:[#allocation5 + $0xb0] sm:$0xff] }
  0x3e   :  { %757 = vmatpush1.bf16.msra.mxu0 %v756_v37  ;;  %809 = vmatpush1.bf16.msra.mxu1 %v808_v16  ;;  %v110_v37 = vld [vmem:[#allocation2 + $0x160] sm:$0xff]  ;;  %v117_v42 = vld [vmem:[#allocation2 + $0x198] sm:$0xff]  ;;  %v818_v43 = vpack.c.bf16 %v153_v34, %v151_v33  ;;  %v155_v46 = vld [vmem:[#allocation5 + $0xc8] sm:$0xff] }
  0x3f   :  { %759 = vmatprep.subr.bf16.mxu0 %v758_v38  ;;  %811 = vmatprep.subr.bf16.mxu1 %v810_v18  ;;  %v112_v38 = vld [vmem:[#allocation2 + $0x170] sm:$0xff]  ;;  %v157_v47 = vld [vmem:[#allocation5 + $0xd8] sm:$0xff]  ;;  %v782_v49 = vpack.c.bf16 %v117_v42, %v115_v39  ;;  %v114_v50 = vld [vmem:[#allocation2 + $0x180] sm:$0xff] }
  0x40   :  { %v116_v51 = vld [vmem:[#allocation2 + $0x190] sm:$0xff]  ;;  %v119_v52 = vld [vmem:[#allocation2 + $0x1a8] sm:$0xff]  ;;  %v121_v54 = vld [vmem:[#allocation2 + $0x1b8] sm:$0xff]  ;;  %v822_v55 = vpack.c.bf16 %v157_v47, %v155_v46 }
  0x41   :  { %v154_v56 = vld [vmem:[#allocation5 + $0xc0] sm:$0xff]  ;;  %v156_v57 = vld [vmem:[#allocation5 + $0xd0] sm:$0xff]  ;;  %v159_v58 = vld [vmem:[#allocation5 + $0xe8] sm:$0xff]  ;;  %v786_v61 = vpack.c.bf16 %v121_v54, %v119_v52 }
  0x42   :  { %761 = vmatpush1.bf16.msra.mxu0 %v760_v44  ;;  %813 = vmatpush1.bf16.msra.mxu1 %v812_v28  ;;  %v150_v44 = vld [vmem:[#allocation5 + $0xa0] sm:$0xff]  ;;  %v161_v59 = vld [vmem:[#allocation5 + $0xf8] sm:$0xff]  ;;  %v120_v63 = vld [vmem:[#allocation2 + $0x1b0] sm:$0xff]  ;;  %v824_v1 = vpack.c.bf16 %v156_v57, %v154_v56 }
  0x43   :  { %763 = vmatprep.subr.bf16.mxu0 %v762_v48  ;;  %815 = vmatprep.subr.bf16.mxu1 %v814_v30  ;;  %v780_v48 = vpack.c.bf16 %v112_v38, %v110_v37  ;;  %v820_v53 = vpack.c.bf16 %v152_v45, %v150_v44  ;;  %v118_v62 = vld [vmem:[#allocation2 + $0x1a0] sm:$0xff]  ;;  %v125_v2 = vld [vmem:[#allocation2 + $0x1d8] sm:$0xff]  ;;  %v826_v3 = vpack.c.bf16 %v161_v59, %v159_v58  ;;  %v160_v5 = vld [vmem:[#allocation5 + $0xf0] sm:$0xff] }
  0x44   :  { %v158_v4 = vld [vmem:[#allocation5 + $0xe0] sm:$0xff]  ;;  %v163_v6 = vld [vmem:[#allocation5 + $0x108] sm:$0xff]  ;;  %v165_v7 = vld [vmem:[#allocation5 + $0x118] sm:$0xff]  ;;  %v788_v8 = vpack.c.bf16 %v120_v63, %v118_v62 }
  0x45   :  { %v122_v10 = vld [vmem:[#allocation2 + $0x1c0] sm:$0xff]  ;;  %v828_v13 = vpack.c.bf16 %v160_v5, %v158_v4  ;;  %v129_v14 = vld [vmem:[#allocation2 + $0x1f8] sm:$0xff]  ;;  %v830_v15 = vpack.c.bf16 %v165_v7, %v163_v6  ;;  %v164_v17 = vld [vmem:[#allocation5 + $0x110] sm:$0xff] }
  0x46   :  { %765 = vmatpush1.bf16.msra.mxu0 %v764_v60  ;;  %817 = vmatpush1.bf16.msra.mxu1 %v816_v40  ;;  %v784_v60 = vpack.c.bf16 %v116_v51, %v114_v50  ;;  %v162_v16 = vld [vmem:[#allocation5 + $0x100] sm:$0xff]  ;;  %v167_v18 = vld [vmem:[#allocation5 + $0x128] sm:$0xff]  ;;  %v169_v19 = vld [vmem:[#allocation5 + $0x138] sm:$0xff] }
  0x47   :  { %767 = vmatprep.subr.bf16.mxu0 %v766_v0  ;;  %819 = vmatprep.subr.bf16.mxu1 %v818_v43  ;;  %v123_v0 = vld [vmem:[#allocation2 + $0x1c8] sm:$0xff]  ;;  %v126_v22 = vld [vmem:[#allocation2 + $0x1e0] sm:$0xff]  ;;  %v834_v25 = vpack.c.bf16 %v169_v19, %v167_v18  ;;  %v168_v27 = vld [vmem:[#allocation5 + $0x130] sm:$0xff] }
  0x48   :  { %v790_v9 = vpack.c.bf16 %v125_v2, %v123_v0  ;;  %v166_v26 = vld [vmem:[#allocation5 + $0x120] sm:$0xff]  ;;  %v171_v28 = vld [vmem:[#allocation5 + $0x148] sm:$0xff]  ;;  %v173_v29 = vld [vmem:[#allocation5 + $0x158] sm:$0xff] }
  0x49   :  { %v836_v31 = vpack.c.bf16 %v168_v27, %v166_v26  ;;  %v838_v32 = vpack.c.bf16 %v173_v29, %v171_v28  ;;  %v170_v33 = vld [vmem:[#allocation5 + $0x140] sm:$0xff]  ;;  %v172_v34 = vld [vmem:[#allocation5 + $0x150] sm:$0xff]  ;;  %v1124_v38 = vld [vmem:[%s1411_s0 + $0x18] sm:$0xff] }
  0x4a   :  { %769 = vmatpush1.bf16.msra.mxu0 %v768_v11  ;;  %821 = vmatpush1.bf16.msra.mxu1 %v820_v53  ;;  %v124_v11 = vld [vmem:[#allocation2 + $0x1d0] sm:$0xff]  ;;  %v1119_v37 = vld [vmem:[%s1411_s0] sm:$0xff]  ;;  %v840_v39 = vpack.c.bf16 %v172_v34, %v170_v33  ;;  %v1136_v45 = vld [vmem:[%s1411_s0 + $0x28] sm:$0xff] }
  0x4b   :  { %771 = vmatprep.subr.bf16.mxu0 %v770_v12  ;;  %823 = vmatprep.subr.bf16.mxu1 %v822_v55  ;;  %v127_v12 = vld [vmem:[#allocation2 + $0x1e8] sm:$0xff]  ;;  %v792_v20 = vpack.c.bf16 %v124_v11, %v122_v10  ;;  %v174_v42 = vld [vmem:[#allocation5 + $0x160] sm:$0xff]  ;;  %v176_v43 = vld [vmem:[#allocation5 + $0x170] sm:$0xff] }
  0x4c   :  { %v794_v21 = vpack.c.bf16 %v129_v14, %v127_v12  ;;  %v1131_v44 = vld [vmem:[%s1411_s0 + $0x10] sm:$0xff]  ;;  %v844_v46 = vpack.c.bf16 %v176_v43, %v174_v42  ;;  %v1143_v47 = vld [vmem:[%s1411_s0 + $0x20] sm:$0xff]  ;;  %v1160_v50 = vld [vmem:[%s1411_s0 + $0x48] sm:$0xff] }
  0x4d   :  { %v1167_v51 = vld [vmem:[%s1411_s0 + $0x40] sm:$0xff]  ;;  %v1172_v52 = vld [vmem:[%s1411_s0 + $0x58] sm:$0xff]  ;;  %v1179_v53 = vld [vmem:[%s1411_s0 + $0x50] sm:$0xff] }
  0x4e   :  { %773 = vmatpush1.bf16.msra.mxu0 %v772_v23  ;;  %825 = vmatpush1.bf16.msra.mxu1 %v824_v1  ;;  %v128_v23 = vld [vmem:[#allocation2 + $0x1f0] sm:$0xff]  ;;  %v179_v54 = vld [vmem:[#allocation5 + $0x188] sm:$0xff]  ;;  %v181_v55 = vld [vmem:[#allocation5 + $0x198] sm:$0xff] }
  0x4f   :  { %775 = vmatprep.subr.bf16.mxu0 %v774_v24  ;;  %827 = vmatprep.subr.bf16.mxu1 %v826_v3  ;;  %v832_v24 = vpack.c.bf16 %v164_v17, %v162_v16  ;;  %v796_v30 = vpack.c.bf16 %v128_v23, %v126_v22  ;;  %v846_v56 = vpack.c.bf16 %v181_v55, %v179_v54  ;;  %v178_v57 = vld [vmem:[#allocation5 + $0x180] sm:$0xff]  ;;  %v180_v58 = vld [vmem:[#allocation5 + $0x190] sm:$0xff]  ;;  %v213_v3 = vld [vmem:[%s1416_s5 + $0x88] sm:$0xff] }
  0x50   :  { %v848_v59 = vpack.c.bf16 %v180_v58, %v178_v57  ;;  %v182_v63 = vld [vmem:[#allocation5 + $0x1a0] sm:$0xff]  ;;  %v184_v0 = vld [vmem:[#allocation5 + $0x1b0] sm:$0xff]  ;;  %v187_v5 = vld [vmem:[#allocation5 + $0x1c8] sm:$0xff] }
  0x51   :  { %v852_v1 = vpack.c.bf16 %v184_v0, %v182_v63  ;;  %v212_v2 = vld [vmem:[%s1416_s5 + $0x80] sm:$0xff]  ;;  %v189_v6 = vld [vmem:[#allocation5 + $0x1d8] sm:$0xff]  ;;  %v188_v11 = vld [vmem:[#allocation5 + $0x1d0] sm:$0xff] }
  0x52   :  { %777 = vmatpush1.bf16.msra.mxu0 %v776_v35  ;;  %829 = vmatpush1.bf16.msra.mxu1 %v828_v13  ;;  %v175_v35 = vld [vmem:[#allocation5 + $0x168] sm:$0xff]  ;;  %v862_v4 = vpack.c.bf16 %v213_v3, %v212_v2  ;;  %v196_v7 = vld [vmem:[%s1416_s5] sm:$0xff]  ;;  %v214_v14 = vld [vmem:[%s1416_s5 + $0x90] sm:$0xff] }
  0x53   :  { %779 = vmatprep.subr.bf16.mxu0 %v778_v36  ;;  %831 = vmatprep.subr.bf16.mxu1 %v830_v15  ;;  %v177_v36 = vld [vmem:[#allocation5 + $0x178] sm:$0xff]  ;;  %v186_v10 = vld [vmem:[#allocation5 + $0x1c0] sm:$0xff]  ;;  %v191_v17 = vld [vmem:[#allocation5 + $0x1e8] sm:$0xff] }
  0x54   :  { %v842_v40 = vpack.c.bf16 %v177_v36, %v175_v35  ;;  %v856_v13 = vpack.c.bf16 %v188_v11, %v186_v10  ;;  %v215_v15 = vld [vmem:[%s1416_s5 + $0x98] sm:$0xff]  ;;  %v198_v19 = vld [vmem:[%s1416_s5 + $0x10] sm:$0xff]  ;;  %v190_v22 = vld [vmem:[#allocation5 + $0x1e0] sm:$0xff]  ;;  %v229_v10 = vlaneseq }
  0x55   :  { %v1203_v16 = vpack.c.bf16 %v215_v15, %v214_v14  ;;  %v193_v18 = vld [vmem:[#allocation5 + $0x1f8] sm:$0xff]  ;;  %v192_v23 = vld [vmem:[#allocation5 + $0x1f0] sm:$0xff]  ;;  %v216_v26 = vld [vmem:[%s1416_s5 + $0xa0] sm:$0xff] }
  0x56   :  { %781 = vmatpush1.bf16.msra.mxu0 %v780_v48  ;;  %833 = vmatpush1.bf16.msra.mxu1 %v832_v24  ;;  %v1148_v48 = vld [vmem:[%s1411_s0 + $0x38] sm:$0xff]  ;;  %v217_v27 = vld [vmem:[%s1416_s5 + $0xa8] sm:$0xff]  ;;  %v200_v29 = vld [vmem:[%s1416_s5 + $0x20] sm:$0xff]  ;;  %v230_v11 = vshrl.u32 %v229_v10, 7 }
  0x57   :  { %783 = vmatprep.subr.bf16.mxu0 %v782_v49  ;;  %835 = vmatprep.subr.bf16.mxu1 %v834_v25  ;;  %v1155_v49 = vld [vmem:[%s1411_s0 + $0x30] sm:$0xff]  ;;  %v860_v25 = vpack.c.bf16 %v192_v23, %v190_v22  ;;  %v1221_v28 = vpack.c.bf16 %v217_v27, %v216_v26  ;;  %v219_v33 = vld [vmem:[%s1416_s5 + $0xb8] sm:$0xff]  ;;  %v221_v42 = vld [vmem:[%s1416_s5 + $0xc8] sm:$0xff] }
  0x58   :  { %v202_v35 = vld [vmem:[%s1416_s5 + $0x30] sm:$0xff]  ;;  %v203_v36 = vld [vmem:[%s1416_s5 + $0x38] sm:$0xff]  ;;  %v205_v54 = vld [vmem:[%s1416_s5 + $0x48] sm:$0xff]  ;;  %v235_v15 = vsub.s32 1, %v230_v11 }
  0x59   :  { %v223_v57 = vld [vmem:[%s1416_s5 + $0xd8] sm:$0xff]  ;;  %v225_v63 = vld [vmem:[%s1416_s5 + $0xe8] sm:$0xff]  ;;  %v194_v14 = vld [vmem:[%s1414_s3] sm:$0x3] }
  0x5a   :  { %785 = vmatpush1.bf16.msra.mxu0 %v784_v60  ;;  %837 = vmatpush1.bf16.msra.mxu1 %v836_v31  ;;  %v183_v60 = vld [vmem:[#allocation5 + $0x1a8] sm:$0xff] }
  0x5b   :  { %787 = vmatprep.subr.bf16.mxu0 %v786_v61  ;;  %839 = vmatprep.subr.bf16.mxu1 %v838_v32  ;;  %v185_v61 = vld [vmem:[#allocation5 + $0x1b8] sm:$0xff]  ;;  %v218_v32 = vld [vmem:[%s1416_s5 + $0xb0] sm:$0xff]  ;;  %v209_v2 = vld [vmem:[%s1416_s5 + $0x68] sm:$0xff] }
  0x5c   :  { %v850_v62 = vpack.c.bf16 %v185_v61, %v183_v60  ;;  %v1239_v34 = vpack.c.bf16 %v219_v33, %v218_v32  ;;  %v207_v60 = vld [vmem:[%s1416_s5 + $0x58] sm:$0xff] }
  0x5e   :  { %789 = vmatpush1.bf16.msra.mxu0 %v788_v8  ;;  %841 = vmatpush1.bf16.msra.mxu1 %v840_v39  ;;  %v854_v8 = vpack.c.bf16 %v189_v6, %v187_v5  ;;  %v1247_v39 = vpack.c.bf16 %v203_v36, %v202_v35  ;;  %v227_v5 = vld [vmem:[%s1416_s5 + $0xf8] sm:$0xff]  ;;  %v195_v35 = vld [vmem:[%s1415_s4] sm:$0x3]  ;;  %s1039_s4 = smov [#allocation7]  }
  0x5f   :  { %791 = vmatprep.subr.bf16.mxu0 %v790_v9  ;;  %843 = vmatprep.subr.bf16.mxu1 %v842_v40  ;;  %v197_v9 = vld [vmem:[%s1416_s5 + $0x8] sm:$0xff]  ;;  %v220_v40 = vld [vmem:[%s1416_s5 + $0xc0] sm:$0xff]  ;;  %s667_s22 = sshll.u32 %s1039_s4, 4  ;;  %s668_s22 = int_to_ptr.vmem [resolvable:$true] %s667_s22 }
  0x60   :  { %v1194_v12 = vpack.c.bf16 %v197_v9, %v196_v7  ;;  %v1257_v43 = vpack.c.bf16 %v221_v42, %v220_v40  ;;  %v210_v7 = vld [vmem:[%s1416_s5 + $0x70] sm:$0xff]  ;;  %s1007_s23 = scalar_lea.vmem %s668_s22, 1536  ;;  %p1012_p3 = scmp.lt.s32.totalorder %s668_s22, %s668_s22 }
  0x61   :  { %p1008_p2 = scmp.ne.s32.totalorder %s668_s22, %s1007_s23  ;;  %p1013_p4 = scmp.lt.s32.totalorder %s1007_s23, %s1007_s23 }
  0x62   :  { %793 = vmatpush1.bf16.msra.mxu0 %v792_v20  ;;  %845 = vmatpush1.bf16.msra.mxu1 %v844_v46  ;;  %v858_v20 = vpack.c.bf16 %v193_v18, %v191_v17  ;;  %v204_v46 = vld [vmem:[%s1416_s5 + $0x40] sm:$0xff]  ;;  %v236_v18 = vrot.slane %v194_v14, %v235_v15 }
  0x63   :  { %795 = vmatprep.subr.bf16.mxu0 %v794_v21  ;;  %847 = vmatprep.subr.bf16.mxu1 %v846_v56  ;;  %v199_v21 = vld [vmem:[%s1416_s5 + $0x18] sm:$0xff]  ;;  %v1265_v55 = vpack.c.bf16 %v205_v54, %v204_v46  ;;  %v222_v56 = vld [vmem:[%s1416_s5 + $0xd0] sm:$0xff]  ;;  %p1014_p5 = por %p1013_p4, %p1012_p3 }
  0x64   :  { %v1212_v24 = vpack.c.bf16 %v199_v21, %v198_v19  ;;  %v1275_v58 = vpack.c.bf16 %v223_v57, %v222_v56 }
  0x65   :  { %p1015_p6 = pnand %p1014_p5, %p1008_p2 }
  0x66   :  { %797 = vmatpush1.bf16.msra.mxu0 %v796_v30  ;;  %849 = vmatpush1.bf16.msra.mxu1 %v848_v59  ;;  %v201_v30 = vld [vmem:[%s1416_s5 + $0x28] sm:$0xff]  ;;  %v206_v59 = vld [vmem:[%s1416_s5 + $0x50] sm:$0xff] }
  0x67   :  { %851 = vmatprep.subr.bf16.mxu1 %v850_v62  ;;  %863 = vmatprep.subr.bf16.mxu0 %v862_v4  ;;  %v1229_v31 = vpack.c.bf16 %v201_v30, %v200_v29  ;;  %v1283_v61 = vpack.c.bf16 %v207_v60, %v206_v59  ;;  %v224_v62 = vld [vmem:[%s1416_s5 + $0xe0] sm:$0xff]  ;;  %v1331_v60 = vrot.slane %v195_v35, %v235_v15 }
  0x68   :  { %v1293_v0 = vpack.c.bf16 %v225_v63, %v224_v62 }
  0x69   :  { %304 = vmatmul.mubr.f32.vlgmr.msra.gmra.mrb[0].mxu0 %v1119_v37 }
  0x6a   :  { %309 = vmatprep.mubr.f32.mxu0 %v1124_v38  ;;  %853 = vmatpush1.bf16.msra.mxu1 %v852_v1  ;;  %v208_v1 = vld [vmem:[%s1416_s5 + $0x60] sm:$0xff] }
  0x6b   :  { %855 = vmatprep.subr.bf16.mxu1 %v854_v8  ;;  %865 = vmatpush3.bf16.msra.mxu0 %v1194_v12  ;;  %v1301_v3 = vpack.c.bf16 %v209_v2, %v208_v1  ;;  %v211_v8 = vld [vmem:[%s1416_s5 + $0x78] sm:$0xff] }
  0x6c   :  { %867 = vmatprep.subr.bf16.mxu0 %v1203_v16  ;;  %v1319_v9 = vpack.c.bf16 %v211_v8, %v210_v7 }
  0x6d   :  { %310 = vmatmul.mubr.f32.gmra.mrb[2].mxu0 %v1131_v44 }
  0x6e   :  { %315 = vmatprep.mubr.f32.mxu0 %v1136_v45  ;;  %857 = vmatpush1.bf16.msra.mxu1 %v856_v13  ;;  %v231_v13 = vsub.s32 0, %v230_v11 }
  0x6f   :  { %859 = vmatprep.subr.bf16.mxu1 %v858_v20  ;;  %869 = vmatpush3.bf16.msra.mxu0 %v1212_v24 }
  0x70   :  { %871 = vmatprep.subr.bf16.mxu0 %v1221_v28  ;;  %v232_v17 = vrot.slane %v194_v14, %v231_v13  ;;  %v1329_v57 = vrot.slane %v195_v35, %v231_v13 }
  0x71   :  { %316 = vmatmul.mubr.f32.gmra.mrb[4].mxu0 %v1143_v47 }
  0x72   :  { %321 = vmatprep.mubr.f32.mxu0 %v1148_v48  ;;  %861 = vmatpush1.bf16.msra.mxu1 %v860_v25 }
  0x73   :  { %894 = vmatprep.subr.bf16.mxu1 %v862_v4  ;;  %873 = vmatpush3.bf16.msra.mxu0 %v1229_v31  ;;  %v226_v4 = vld [vmem:[%s1416_s5 + $0xf0] sm:$0xff] }
  0x74   :  { %875 = vmatprep.subr.bf16.mxu0 %v1239_v34  ;;  %v1311_v6 = vpack.c.bf16 %v227_v5, %v226_v4 }
  0x75   :  { %322 = vmatmul.mubr.f32.gmra.mrb[6].mxu0 %v1155_v49 }
  0x76   :  { %327 = vmatprep.mubr.f32.mxu0 %v1160_v50 }
  0x77   :  { %877 = vmatpush3.bf16.msra.mxu0 %v1247_v39 }
  0x78   :  { %879 = vmatprep.subr.bf16.mxu0 %v1257_v43 }
  0x79   :  { %328 = vmatmul.mubr.f32.gmra.mrb[8].mxu0 %v1167_v51 }
  0x7a   :  { %333 = vmatprep.mubr.f32.mxu0 %v1172_v52 }
  0x7b   :  { %881 = vmatpush3.bf16.msra.mxu0 %v1265_v55 }
  0x7c   :  { %883 = vmatprep.subr.bf16.mxu0 %v1275_v58 }
  0x7d   :  { %334 = vmatmul.mubr.f32.gmra.mrb[10].mxu0 %v1179_v53 }
  0x7f   :  { %885 = vmatpush3.bf16.msra.mxu0 %v1283_v61 }
  0x80   :  { %887 = vmatprep.subr.bf16.mxu0 %v1293_v0 }
  0x83   :  { %889 = vmatpush3.bf16.msra.mxu0 %v1301_v3 }
  0x84   :  { %891 = vmatprep.subr.bf16.mxu0 %v1311_v6 }
  0x87   :  { %893 = vmatpush3.bf16.msra.mxu0 %v1319_v9 }
 0x13c   :  { %v305_v19 = vpop.f32.mrb[0].mxu0 }
 0x13d   :  { %v306_v20 = vadd.f32 %v305_v19, %v232_v17  ;;  %v307_v21 = vpop.f32.mrb[1].mxu0 }
 0x13e   :  { %v308_v22 = vadd.f32 %v307_v21, %v236_v18 }
 0x13f   :  { %915 = vtanh.f32 %v306_v20 }
 0x140   :  { %917 = vtanh.f32 %v308_v22  ;;  %v311_v23 = vpop.f32.mrb[2].mxu0 }
 0x141   :  { %v312_v25 = vadd.f32 %v311_v23, %v232_v17  ;;  %v313_v26 = vpop.f32.mrb[3].mxu0 }
 0x142   :  { %v314_v27 = vadd.f32 %v313_v26, %v236_v18 }
 0x143   :  { %919 = vtanh.f32 %v312_v25 }
 0x144   :  { %921 = vtanh.f32 %v314_v27  ;;  %v317_v29 = vpop.f32.mrb[4].mxu0 }
 0x145   :  { %v318_v30 = vadd.f32 %v317_v29, %v232_v17  ;;  %v319_v32 = vpop.f32.mrb[5].mxu0 }
 0x146   :  { %v320_v33 = vadd.f32 %v319_v32, %v236_v18 }
 0x147   :  { %923 = vtanh.f32 %v318_v30 }
 0x148   :  { %925 = vtanh.f32 %v320_v33  ;;  %v323_v36 = vpop.f32.mrb[6].mxu0 }
 0x149   :  { %v916_v40 = vpop.eup %915  ;;  %v324_v42 = vadd.f32 %v323_v36, %v232_v17  ;;  %v325_v46 = vpop.f32.mrb[7].mxu0 }
 0x14a   :  { %v918_v54 = vpop.eup %917  ;;  %v465_v56 = vmul.f32 %v916_v40, %v916_v40  ;;  %v326_v59 = vadd.f32 %v325_v46, %v236_v18 }
 0x14b   :  { %927 = vtanh.f32 %v324_v42  ;;  %416 = vmatprep.mubr.f32.mxu1 %v918_v54  ;;  %v466_v62 = vmul.f32 %v918_v54, %v918_v54 }
 0x14c   :  { %v477_v63 = vsub.f32 1.0, %v465_v56  ;;  %929 = vtanh.f32 %v326_v59  ;;  %v329_v1 = vpop.f32.mrb[8].mxu0  ;;  %417 = vmatmul.mubr.f32.vlgmr.msra.gmra.mrb[0].mxu1 %v916_v40 }
 0x14d   :  { %v920_v2 = vpop.eup %919  ;;  %v330_v4 = vadd.f32 %v329_v1, %v232_v17  ;;  %v331_v5 = vpop.f32.mrb[9].mxu0  ;;  %902 = vmatpush3.bf16.msra.mxu1 %v1194_v12  ;;  %v478_v7 = vsub.f32 1.0, %v466_v62 }
 0x14e   :  { %v922_v8 = vpop.eup %921  ;;  %v500_v10 = vmul.f32 %v1329_v57, %v477_v63  ;;  %v332_v11 = vadd.f32 %v331_v5, %v236_v18  ;;  %895 = vmatprep.subr.bf16.mxu1 %v1203_v16  ;;  %v467_v13 = vmul.f32 %v920_v2, %v920_v2 }
 0x14f   :  { %931 = vtanh.f32 %v330_v4  ;;  %422 = vmatprep.mubr.f32.mxu1 %v922_v8  ;;  %v501_v14 = vmul.f32 %v1331_v60, %v478_v7  ;;  %v468_v15 = vmul.f32 %v922_v8, %v922_v8 }
 0x150   :  { %v512_v19 = vadd.f32 1.0, %v500_v10  ;;  %933 = vtanh.f32 %v332_v11  ;;  %v335_v20 = vpop.f32.mrb[10].mxu0  ;;  %423 = vmatmul.mubr.f32.gmra.mrb[2].mxu1 %v920_v2  ;;  %v479_v21 = vsub.f32 1.0, %v467_v13 }
 0x151   :  { %v924_v22 = vpop.eup %923  ;;  %v336_v12 = vadd.f32 %v335_v20, %v232_v17  ;;  %v337_v23 = vpop.f32.mrb[11].mxu0  ;;  %903 = vmatpush3.bf16.msra.mxu1 %v1212_v24  ;;  %v513_v25 = vadd.f32 1.0, %v501_v14  ;;  %v480_v26 = vsub.f32 1.0, %v468_v15 }
 0x152   :  { %v926_v27 = vpop.eup %925  ;;  %v338_v16 = vadd.f32 %v337_v23, %v236_v18  ;;  %896 = vmatprep.subr.bf16.mxu1 %v1221_v28  ;;  %v524_v29 = vand.u32 2147483647, %v512_v19  ;;  %v502_v30 = vmul.f32 %v1329_v57, %v479_v21  ;;  %v469_v32 = vmul.f32 %v924_v22, %v924_v22 }
 0x153   :  { %935 = vtanh.f32 %v336_v12  ;;  %428 = vmatprep.mubr.f32.mxu1 %v926_v27  ;;  %v525_v33 = vand.u32 2147483647, %v513_v25  ;;  %v503_v35 = vmul.f32 %v1331_v60, %v480_v26  ;;  %v470_v36 = vmul.f32 %v926_v27, %v926_v27 }
 0x154   :  { %937 = vtanh.f32 %v338_v16  ;;  %429 = vmatmul.mubr.f32.gmra.mrb[4].mxu1 %v924_v22  ;;  %v514_v17 = vadd.f32 1.0, %v502_v30  ;;  %v481_v24 = vsub.f32 1.0, %v469_v32 }
 0x155   :  { %v928_v40 = vpop.eup %927  ;;  %904 = vmatpush3.bf16.msra.mxu1 %v1229_v31  ;;  %939 = vlog2.f32 %v525_v33  ;;  %v515_v18 = vadd.f32 1.0, %v503_v35  ;;  %v482_v28 = vsub.f32 1.0, %v470_v36 }
 0x156   :  { %v930_v42 = vpop.eup %929  ;;  %v471_v46 = vmul.f32 %v928_v40, %v928_v40  ;;  %897 = vmatprep.subr.bf16.mxu1 %v1239_v34  ;;  %941 = vlog2.f32 %v524_v29  ;;  %v526_v54 = vand.u32 2147483647, %v514_v17  ;;  %v504_v56 = vmul.f32 %v1329_v57, %v481_v24 }
 0x157   :  { %434 = vmatprep.mubr.f32.mxu1 %v930_v42  ;;  %v527_v59 = vand.u32 2147483647, %v515_v18  ;;  %v505_v62 = vmul.f32 %v1331_v60, %v482_v28  ;;  %v472_v63 = vmul.f32 %v930_v42, %v930_v42 }
 0x158   :  { %v483_v1 = vsub.f32 1.0, %v471_v46  ;;  %435 = vmatmul.mubr.f32.gmra.mrb[6].mxu1 %v928_v40  ;;  %943 = vlog2.f32 %v526_v54  ;;  %v516_v31 = vadd.f32 1.0, %v504_v56 }
 0x159   :  { %v932_v2 = vpop.eup %931  ;;  %905 = vmatpush3.bf16.msra.mxu1 %v1247_v39  ;;  %945 = vlog2.f32 %v527_v59  ;;  %v517_v4 = vadd.f32 1.0, %v505_v62  ;;  %v484_v5 = vsub.f32 1.0, %v472_v63 }
 0x15a   :  { %v934_v34 = vpop.eup %933  ;;  %v506_v7 = vmul.f32 %v1329_v57, %v483_v1  ;;  %898 = vmatprep.subr.bf16.mxu1 %v1257_v43  ;;  %v528_v8 = vand.u32 2147483647, %v516_v31  ;;  %v473_v10 = vmul.f32 %v932_v2, %v932_v2 }
 0x15b   :  { %440 = vmatprep.mubr.f32.mxu1 %v934_v34  ;;  %v529_v11 = vand.u32 2147483647, %v517_v4  ;;  %v507_v13 = vmul.f32 %v1331_v60, %v484_v5  ;;  %v474_v14 = vmul.f32 %v934_v34, %v934_v34 }
 0x15c   :  { %v518_v15 = vadd.f32 1.0, %v506_v7  ;;  %441 = vmatmul.mubr.f32.gmra.mrb[8].mxu1 %v932_v2  ;;  %947 = vlog2.f32 %v528_v8  ;;  %v485_v19 = vsub.f32 1.0, %v473_v10 }
 0x15d   :  { %v936_v39 = vpop.eup %935  ;;  %906 = vmatpush3.bf16.msra.mxu1 %v1265_v55  ;;  %949 = vlog2.f32 %v529_v11  ;;  %v519_v20 = vadd.f32 1.0, %v507_v13  ;;  %v486_v21 = vsub.f32 1.0, %v474_v14 }
 0x15e   :  { %v938_v22 = vpop.eup %937  ;;  %899 = vmatprep.subr.bf16.mxu1 %v1275_v58  ;;  %v530_v43 = vand.u32 2147483647, %v518_v15  ;;  %v508_v12 = vmul.f32 %v1329_v57, %v485_v19  ;;  %v475_v23 = vmul.f32 %v936_v39, %v936_v39 }
 0x15f   :  { %v940_v25 = vpop.eup %939  ;;  %446 = vmatprep.mubr.f32.mxu1 %v938_v22  ;;  %v531_v26 = vand.u32 2147483647, %v519_v20  ;;  %v509_v27 = vmul.f32 %v1331_v60, %v486_v21  ;;  %v476_v16 = vmul.f32 %v938_v22, %v938_v22 }
 0x160   :  { %v942_v29 = vpop.eup %941  ;;  %447 = vmatmul.mubr.f32.gmra.mrb[10].mxu1 %v936_v39  ;;  %v539_v30 = vmul.f32 0.6931472, %v940_v25  ;;  %951 = vlog2.f32 %v530_v43  ;;  %v520_v55 = vadd.f32 1.0, %v508_v12  ;;  %v487_v32 = vsub.f32 1.0, %v475_v23 }
 0x161   :  { %v537_v33 = vmul.f32 0.6931472, %v942_v29  ;;  %907 = vmatpush3.bf16.msra.mxu1 %v1283_v61  ;;  %953 = vlog2.f32 %v531_v26  ;;  %v521_v58 = vadd.f32 1.0, %v509_v27  ;;  %v488_v35 = vsub.f32 1.0, %v476_v16 }
 0x162   :  { %v944_v36 = vpop.eup %943  ;;  %624 = vmatprep.mubr.f32.mxu0 %v539_v30  ;;  %900 = vmatprep.subr.bf16.mxu1 %v1293_v0  ;;  %v532_v17 = vand.u32 2147483647, %v520_v55  ;;  %v510_v24 = vmul.f32 %v1329_v57, %v487_v32 }
 0x163   :  { %v946_v40 = vpop.eup %945  ;;  %625 = vmatmul.mubr.f32.vlgmr.msra.gmra.mrb[12].mxu0 %v537_v33  ;;  %v533_v18 = vand.u32 2147483647, %v521_v58  ;;  %v511_v28 = vmul.f32 %v1331_v60, %v488_v35  ;;  %v541_v54 = vmul.f32 0.6931472, %v944_v36 }
 0x164   :  { %v543_v42 = vmul.f32 0.6931472, %v946_v40  ;;  %955 = vlog2.f32 %v532_v17  ;;  %v522_v46 = vadd.f32 1.0, %v510_v24 }
 0x165   :  { %908 = vmatpush3.bf16.msra.mxu1 %v1301_v3  ;;  %957 = vlog2.f32 %v533_v18  ;;  %v523_v61 = vadd.f32 1.0, %v511_v28 }
 0x166   :  { %v948_v56 = vpop.eup %947  ;;  %629 = vmatprep.mubr.f32.mxu0 %v543_v42  ;;  %901 = vmatprep.subr.bf16.mxu1 %v1311_v6  ;;  %v534_v0 = vand.u32 2147483647, %v522_v46 }
 0x167   :  { %v950_v59 = vpop.eup %949  ;;  %630 = vmatmul.mubr.f32.gmra.mrb[14].mxu0 %v541_v54  ;;  %v535_v57 = vand.u32 2147483647, %v523_v61  ;;  %v545_v63 = vmul.f32 0.6931472, %v948_v56 }
 0x168   :  { %v547_v62 = vmul.f32 0.6931472, %v950_v59  ;;  %959 = vlog2.f32 %v534_v0 }
 0x169   :  { %909 = vmatpush3.bf16.msra.mxu1 %v1319_v9  ;;  %961 = vlog2.f32 %v535_v57 }
 0x16a   :  { %v952_v60 = vpop.eup %951  ;;  %634 = vmatprep.mubr.f32.mxu0 %v547_v62 }
 0x16b   :  { %v954_v1 = vpop.eup %953  ;;  %635 = vmatmul.mubr.f32.gmra.mrb[16].mxu0 %v545_v63  ;;  %v549_v31 = vmul.f32 0.6931472, %v952_v60 }
 0x16c   :  { %v551_v3 = vmul.f32 0.6931472, %v954_v1 }
 0x16e   :  { %v956_v2 = vpop.eup %955  ;;  %639 = vmatprep.mubr.f32.mxu1 %v551_v3 }
 0x16f   :  { %v958_v4 = vpop.eup %957  ;;  %640 = vmatmul.mubr.f32.vlgmr.msra.gmra.mrb[12].mxu1 %v549_v31  ;;  %v553_v5 = vmul.f32 0.6931472, %v956_v2 }
 0x170   :  { %v555_v6 = vmul.f32 0.6931472, %v958_v4 }
 0x172   :  { %v960_v34 = vpop.eup %959  ;;  %644 = vmatprep.mubr.f32.mxu1 %v555_v6 }
 0x173   :  { %v962_v7 = vpop.eup %961  ;;  %645 = vmatmul.mubr.f32.gmra.mrb[14].mxu1 %v553_v5  ;;  %v557_v10 = vmul.f32 0.6931472, %v960_v34 }
 0x174   :  { %v559_v8 = vmul.f32 0.6931472, %v962_v7 }
 0x176   :  { %649 = vmatprep.mubr.f32.mxu1 %v559_v8 }
 0x177   :  { %650 = vmatmul.mubr.f32.gmra.mrb[16].mxu1 %v557_v10 }
 0x21f   :  { %v418_v9 = vpop.f32.mrb[0].mxu1 }
 0x220   :  { %v419_v11 = vadd.f32 %v418_v9, %v1119_v37  ;;  %v420_v13 = vpop.f32.mrb[1].mxu1 }
 0x221   :  { %v421_v14 = vadd.f32 %v420_v13, %v1113_v41 }
 0x222   :  { %453 = vst [vmem:[#allocation7] sm:$0xff] %v419_v11 }
 0x223   :  { %454 = vst [vmem:[#allocation7 + $0x8] sm:$0xff] %v421_v14  ;;  %v424_v15 = vpop.f32.mrb[2].mxu1 }
 0x224   :  { %v425_v19 = vadd.f32 %v424_v15, %v1131_v44  ;;  %v426_v39 = vpop.f32.mrb[3].mxu1 }
 0x225   :  { %v427_v20 = vadd.f32 %v426_v39, %v1124_v38 }
 0x226   :  { %455 = vst [vmem:[#allocation7 + $0x10] sm:$0xff] %v425_v19 }
 0x227   :  { %456 = vst [vmem:[#allocation7 + $0x18] sm:$0xff] %v427_v20  ;;  %v430_v21 = vpop.f32.mrb[4].mxu1 }
 0x228   :  { %v431_v22 = vadd.f32 %v430_v21, %v1143_v47  ;;  %v432_v43 = vpop.f32.mrb[5].mxu1 }
 0x229   :  { %v433_v12 = vadd.f32 %v432_v43, %v1136_v45 }
 0x22a   :  { %457 = vst [vmem:[#allocation7 + $0x20] sm:$0xff] %v431_v22 }
 0x22b   :  { %458 = vst [vmem:[#allocation7 + $0x28] sm:$0xff] %v433_v12  ;;  %v436_v37 = vpop.f32.mrb[6].mxu1 }
 0x22c   :  { %v437_v41 = vadd.f32 %v436_v37, %v1155_v49  ;;  %v438_v23 = vpop.f32.mrb[7].mxu1 }
 0x22d   :  { %v439_v25 = vadd.f32 %v438_v23, %v1148_v48 }
 0x22e   :  { %459 = vst [vmem:[#allocation7 + $0x30] sm:$0xff] %v437_v41 }
 0x22f   :  { %460 = vst [vmem:[#allocation7 + $0x38] sm:$0xff] %v439_v25  ;;  %v442_v44 = vpop.f32.mrb[8].mxu1 }
 0x230   :  { %v443_v38 = vadd.f32 %v442_v44, %v1167_v51  ;;  %v444_v26 = vpop.f32.mrb[9].mxu1 }
 0x231   :  { %v445_v27 = vadd.f32 %v444_v26, %v1160_v50 }
 0x232   :  { %461 = vst [vmem:[#allocation7 + $0x40] sm:$0xff] %v443_v38 }
 0x233   :  { %462 = vst [vmem:[#allocation7 + $0x48] sm:$0xff] %v445_v27  ;;  %v448_v45 = vpop.f32.mrb[10].mxu1 }
 0x234   :  { %v449_v47 = vadd.f32 %v448_v45, %v1179_v53  ;;  %v450_v16 = vpop.f32.mrb[11].mxu1 }
 0x235   :  { %v451_v49 = vadd.f32 %v450_v16, %v1172_v52 }
 0x236   :  { %463 = vst [vmem:[#allocation7 + $0x50] sm:$0xff] %v449_v47  ;;  %v716_v48 = vpop.f32.mrb[12].mxu0 }
 0x237   :  { %464 = vst [vmem:[#allocation7 + $0x58] sm:$0xff] %v451_v49  ;;  %v717_v29 = vpop.f32.mrb[13].mxu0 }
 0x238   :  { %v718_v51 = vadd.f32 %v717_v29, %v716_v48 }
 0x239   :  { %1018 = shalt.err (!%p1015_p6)
}
 0x23a   :  { %s1019_s25 = scalar_lea.hbm %s1417_s6, 1536 }
 0x23b   :  { %p1020_p7 = scmp.ne.s32.totalorder %s1417_s6, %s1019_s25  ;;  %p1023_p8 = scmp.lt.u32.totalorder %s1019_s25, %s1417_s6 }
 0x23d   :  { %p1025_p9 = pnand %p1023_p8, %p1020_p7 }
 0x23f   :  { %1028 = shalt.err (!%p1025_p9)
}
 0x240   :  { %673 = dma.vmem_to_hbm [thread:$0]  %s668_s22, 1536, %s1417_s6, [#allocation4], %s1036_s11, %s1036_s11, %s1037_s12   ;;  %v719_v50 = vpop.f32.mrb[14].mxu0 }
 0x241   :  { %656 = vst.msk [vmem:[%s1418_s7] sm:$0xff] %vm655_vm0, %v718_v51  ;;  %v720_v52 = vpop.f32.mrb[15].mxu0 }
 0x242   :  { %v721_v53 = vadd.f32 %v720_v52, %v719_v50  ;;  %v722_v30 = vpop.f32.mrb[16].mxu0  ;;  %v725_v33 = vpop.f32.mrb[12].mxu1 }
 0x243   :  { %v723_v55 = vpop.f32.mrb[17].mxu0  ;;  %v726_v58 = vpop.f32.mrb[13].mxu1 }
 0x244   :  { %657 = vst.msk [vmem:[%s1418_s7 + $0x8] sm:$0xff] %vm655_vm0, %v721_v53  ;;  %v724_v32 = vadd.f32 %v723_v55, %v722_v30  ;;  %v727_v35 = vadd.f32 %v726_v58, %v725_v33 }
 0x246   :  { %658 = vst.msk [vmem:[%s1418_s7 + $0x10] sm:$0xff] %vm655_vm0, %v724_v32  ;;  %659 = vst.msk [vmem:[%s1418_s7 + $0x18] sm:$0xff] %vm655_vm0, %v727_v35  ;;  %v728_v36 = vpop.f32.mrb[14].mxu1 }
 0x247   :  { %v729_v17 = vpop.f32.mrb[15].mxu1 }
 0x248   :  { %v730_v24 = vadd.f32 %v729_v17, %v728_v36 }
 0x24a   :  { %660 = vst.msk [vmem:[%s1418_s7 + $0x20] sm:$0xff] %vm655_vm0, %v730_v24  ;;  %v731_v40 = vpop.f32.mrb[16].mxu1 }
 0x24b   :  { %v732_v18 = vpop.f32.mrb[17].mxu1 }
 0x24c   :  { %v733_v28 = vadd.f32 %v732_v18, %v731_v40 }
 0x24e   :  { %661 = vst.msk [vmem:[%s1418_s7 + $0x28] sm:$0xff] %vm655_vm0, %v733_v28 }
 0x24f   :  { %1033 = dma.done.wait [#allocation4], 1536  }
 0x250   :  { %1034 = vsyncadd [#allocation4], 4294965760 }
 0x251   :  { %681 = vsyncpa [#allocation3], 1 }
 0x252   :  { %682 = vsyncpa [#allocation6], 1 }
 0x253   :  { %683 = vsyncpa [#allocation4], 1 }

</bundles_post_ra>
